<compile_context>
chip_gen: v7x
topology: tpu7x:2x2x1
jax: 0.10.0
libtpu: 0.0.40
codegen_flags: <defaults>
</compile_context>

<pallas_src>
import functools

import jax
import jax.numpy as jnp
import numpy as np
from jax.experimental import pallas as pl
from jax.experimental.pallas import tpu as pltpu


_MIB = 1024 * 1024


def _round_up(x: int, m: int) -> int:
    return ((x + m - 1) // m) * m


def _round_down(x: int, m: int) -> int:
    return (x // m) * m


def _identity_kernel(x_ref, o_ref):
    # Pure pass-through: o = x (HBM-bandwidth-bound copy on the load/store path).
    o_ref[...] = x_ref[...]


def _device_tuning():
    """Per-generation (tile_byte_budget, vmem_limit_bytes, use_core_parallel)."""
    try:
        kind = jax.devices()[0].device_kind.lower()
    except Exception:  # pragma: no cover - defensive; fall back to safe values
        kind = ""
    is_v5 = "v5" in kind
    is_v7 = "v7" in kind
    if is_v5:
        # ~0.82 TB/s HBM: 4 MiB tiles already amortise the ~0.35 us step cost.
        tile_bytes = 4 * _MIB
    else:
        # v6e (~1.4 TB/s) / v7x (~3.2 TB/s): 8 MiB tiles keep per-step overhead
        # at a few percent of roofline.
        tile_bytes = 8 * _MIB
    # Footprint = (in + out) x double buffer = 4 x tile, plus headroom; cap at
    # 48 MiB: inside v7x's 64 MiB/TC physical VMEM, above v5e's 16 MiB default.
    vmem_limit = int(min(48 * _MIB, max(32 * _MIB, 4 * tile_bytes + 8 * _MIB)))
    return tile_bytes, vmem_limit, is_v7


def _streaming_copy(x2d, tile_bytes, vmem_limit, use_core_parallel):
    """Tiled lane-dense identity copy over a (rows, lanes) view. No padding:
    grid = cdiv(rows, block_rows); Pallas read-pads / write-masks the ragged
    last block."""
    rows, lanes = x2d.shape
    itemsize = jnp.dtype(x2d.dtype).itemsize
    # Sublane granularity: 8 for 32-bit, 16 for 16-bit, 32 for 8-bit dtypes.
    sublane = 8 * max(1, 4 // itemsize)

    target_rows = max(sublane,
                      _round_down(max(1, tile_bytes // (lanes * itemsize)),
                                  sublane))
    if target_rows >= rows:
        # Single block; a full-extent second-to-last dim waives the 8-divisible
        # rule, so no row padding is ever needed here.
        block_rows = rows
    else:
        block_rows = target_rows

    grid_n = pl.cdiv(rows, block_rows)
    if use_core_parallel and grid_n > 1:
        # v7x: shard the row axis across both TensorCores (each has its own
        # DMA path and 64 MiB VMEM).
        dim_sem = (pltpu.CORE_PARALLEL,)
    else:
        dim_sem = ("parallel",)

    return pl.pallas_call(
        _identity_kernel,
        out_shape=jax.ShapeDtypeStruct(x2d.shape, x2d.dtype),
        grid=(grid_n,),
        in_specs=[pl.BlockSpec((block_rows, lanes), lambda i: (i, 0))],
        out_specs=pl.BlockSpec((block_rows, lanes), lambda i: (i, 0)),
        compiler_params=pltpu.CompilerParams(
            dimension_semantics=dim_sem,
            vmem_limit_bytes=vmem_limit,
        ),
        cost_estimate=pl.CostEstimate(
            flops=0,
            transcendentals=0,
            bytes_accessed=2 * rows * lanes * itemsize,  # real traffic, no pad
        ),
    )(x2d)


def _single_block_vmem_bytes(shape, dtype) -> int:
    """Conservative VMEM bytes for one whole-array block (layout padding)."""
    itemsize = jnp.dtype(dtype).itemsize
    sublane = 8 * max(1, 4 // itemsize)
    dims = list(shape)
    if len(dims) == 0:
        dims = [1, 1]
    if len(dims) == 1:
        dims = [1] + dims
    dims[-1] = _round_up(dims[-1], 128)
    dims[-2] = _round_up(dims[-2], sublane)
    return int(np.prod(dims)) * itemsize


def _single_block_copy(x2d):
    """Whole array as one block (block_shape == full dims); no grid, no pad."""
    return pl.pallas_call(
        _identity_kernel,
        out_shape=jax.ShapeDtypeStruct(x2d.shape, x2d.dtype),
        compiler_params=pltpu.CompilerParams(vmem_limit_bytes=32 * _MIB),
    )(x2d)


@functools.partial(jax.jit, static_argnames=("run_kernel",))
def base_model_forward(x: jax.Array, run_kernel: bool = True) -> jax.Array:
    """Identity forward for BaseModel as a tiled Pallas TPU kernel.

    With run_kernel=False the function returns x directly — zero HBM traffic,
    the true optimum for identity semantics (a copy kernel can never beat it).
    """
    if not run_kernel:
        return x

    orig_shape = x.shape
    total = int(np.prod(orig_shape)) if len(orig_shape) > 0 else 1
    if total == 0:
        return x

    itemsize = jnp.dtype(x.dtype).itemsize
    tile_bytes, vmem_limit, use_core_parallel = _device_tuning()

    # Widest lane count (multiple of 128) that evenly divides the element
    # count -> lane-dense unmasked stores and no pad/slice round trip.
    lanes = next((l for l in (512, 256, 128) if total % l == 0), None)

    if lanes is not None:
        x2d = x.reshape(total // lanes, lanes)  # contiguous reshape: free
        out = _streaming_copy(x2d, tile_bytes, vmem_limit, use_core_parallel)
        return out.reshape(orig_shape)

    # Element count not a multiple of 128.
    if x.ndim >= 2:
        x2d = x.reshape(int(np.prod(orig_shape[:-1])), orig_shape[-1])
    else:
        x2d = x.reshape(1, total)
    if 2 * _single_block_vmem_bytes(x2d.shape, x2d.dtype) <= 12 * _MIB:
        # Small: single whole-array block, no grid, no padding.
        return _single_block_copy(x2d).reshape(orig_shape)

    # Rare fallback: large and not 128-divisible -> pad to 128 lanes, stream,
    # slice the tail back off.
    lanes = 128
    rows = pl.cdiv(total, lanes)
    padded = rows * lanes
    flat = jnp.pad(x.reshape(-1), (0, padded - total))
    out = _streaming_copy(flat.reshape(rows, lanes), tile_bytes, vmem_limit,
                          use_core_parallel)
    return out.reshape(-1)[:total].reshape(orig_shape)


def base_model_num_trainable_params() -> int:
    """Mirror of BaseModel.summary()/__str__(): sum(prod(p.size())) over
    trainable parameters.  BaseModel registers no parameters, so this is 0."""
    params = []  # BaseModel.__init__ only creates a logger; no nn.Parameters.
    return int(sum(np.prod(p.shape) for p in params))


if __name__ == "__main__":
    key = jax.random.PRNGKey(0)
    # Small NCHW input consistent with a PSPNet-style image model.
    x = jax.random.normal(key, (2, 4, 16, 16), dtype=jnp.float32)

    # Kernel path (lane-dense (4, 512) single block, no pad/slice).
    y = base_model_forward(x)
    y = jax.block_until_ready(y)
    assert y.shape == x.shape and y.dtype == x.dtype
    np.testing.assert_allclose(np.asarray(y), np.asarray(x), rtol=0, atol=0)

    # Zero-traffic fast path (true optimum for identity).
    y_fast = jax.block_until_ready(base_model_forward(x, run_kernel=False))
    np.testing.assert_allclose(np.asarray(y_fast), np.asarray(x), rtol=0, atol=0)

    # summary()/__str__() equivalent.
    assert base_model_num_trainable_params() == 0

    print("KERNEL_OK")
</pallas_src>

<mosaic_0001>
module attributes {stable_mosaic.version = 11 : i64} {
  func.func @_identity_kernel(%arg0: i32, %arg1: memref<4x512xf32, #tpu.memory_space<vmem>>, %arg2: memref<4x512xf32, #tpu.memory_space<vmem>>) attributes {dimension_semantics = [#tpu.dimension_semantics<parallel>], iteration_bounds = array<i64: 1>, scalar_prefetch = 0 : i64, scratch_operands = 0 : i64, tpu.core_type = #tpu.core_type<tc>, window_params = [{transform_indices = @transform_0, window_bounds = array<i64: 4, 512>}, {transform_indices = @transform_1, window_bounds = array<i64: 4, 512>}]} {
    %c0 = arith.constant 0 : index
    %c0_0 = arith.constant 0 : index
    %0 = vector.load %arg1[%c0, %c0_0] : memref<4x512xf32, #tpu.memory_space<vmem>>, vector<4x512xf32>
    %c0_1 = arith.constant 0 : index
    %c0_2 = arith.constant 0 : index
    %1 = vector.load %arg2[%c0_1, %c0_2] : memref<4x512xf32, #tpu.memory_space<vmem>>, vector<4x512xf32>
    tpu.vector_store %arg2[%c0_1, %c0_2], %0 {strides = array<i32>} : memref<4x512xf32, #tpu.memory_space<vmem>>, vector<4x512xf32>,
    return
  }
  func.func @transform_0(%arg0: i32) -> (i32, i32) {
    %c0_i32 = arith.constant 0 : i32
    %c0_i32_0 = arith.constant 0 : i32
    return %arg0, %c0_i32 : i32, i32
  }
  func.func @transform_1(%arg0: i32) -> (i32, i32) {
    %c0_i32 = arith.constant 0 : i32
    %c0_i32_0 = arith.constant 0 : i32
    return %arg0, %c0_i32 : i32, i32
  }
}

</mosaic_0001>

<bundles_post_ra>
// kernel: base_model_forward.1
= control target key start
LH: loop header
LB: loop body
LE: loop exit
PB: predicated region body
PF: predicated region fallthrough
CT: control target
= control target key end

     0   :  { %s38_s0 = inlined_call_operand.vmem [shape: f32[4,512], index: 0, kind: input, shape index: {}]   ;;  %s39_s1 = inlined_call_operand.vmem [shape: f32[4,512], index: 1, kind: output, shape index: {}]  }
   0x1   :  { %v8_v0 = vld [vmem:[%s38_s0] sm:$0xff]  ;;  %v9_v1 = vld [vmem:[%s38_s0 + $0x8] sm:$0xff] }
   0x2   :  { %10 = vst [vmem:[%s39_s1] sm:$0xff] %v8_v0  ;;  %11 = vst [vmem:[%s39_s1 + $0x8] sm:$0xff] %v9_v1 }

</bundles_post_ra>
